<compile_context>
chip_gen: v7x
topology: tpu7x:2x2x1
jax: 0.10.0
libtpu: 0.0.40
codegen_flags: <defaults>
</compile_context>

<pallas_src>
import functools

import jax
import jax.numpy as jnp
from jax.experimental import pallas as pl
from jax.experimental.pallas import tpu as pltpu


def _mean_time_kernel(x_ref, o_ref, *scratch, true_t, tt, mask_tail):
    """Accumulate a sum over the time axis; emit the mean on the last block."""
    acc_ref = scratch[0] if scratch else o_ref   # f32 accumulator
    t = pl.program_id(1)                         # time-block index (reduction)

    @pl.when(t == 0)
    def _init():
        acc_ref[...] = jnp.zeros_like(acc_ref)

    x = x_ref[...].astype(jnp.float32)           # (TT, TN)
    if mask_tail:
        # Zero rows past the true sequence length in the last partial block so
        # padded timesteps don't bias the mean.
        row = jax.lax.broadcasted_iota(jnp.int32, x.shape, 0)
        x = jnp.where(row + t * tt < true_t, x, 0.0)
    acc_ref[...] += jnp.sum(x, axis=0, keepdims=True)

    @pl.when(t == pl.num_programs(1) - 1)
    def _finalize():
        o_ref[...] = (acc_ref[...] * jnp.float32(1.0 / true_t)).astype(o_ref.dtype)


def _pick_lane_block(n, lane_block):
    if n <= 128 or n % 128 != 0:
        # Full-extent lane block is always a legal block shape; typical B*D is
        # small enough that a single contiguous block is fine here.
        return n
    return max(128, (min(lane_block, n) // 128) * 128)


def _pick_time_block(t, tn, itemsize, time_block):
    # Hard layout constraint: second-to-last block dim divisible by the
    # sublane pack (8 for 32-bit, 16 for 16-bit) or equal to the full extent.
    sublane = 8 if itemsize >= 4 else (16 if itemsize == 2 else 32)
    if time_block is None:
        budget = 8 * 1024 * 1024          # bytes per pipelined input buffer
        tt = budget // max(1, tn * itemsize)
        tt = max(sublane, (tt // sublane) * sublane)
    else:
        tt = int(time_block)
    if tt >= t:
        return t                           # full extent: always legal
    return max(sublane, (tt // sublane) * sublane)


def avg_encoder_forward(sent, sent_len=None, *, use_pallas=None,
                        time_block=None, lane_block=2048):
    """Pallas equivalent of AVGEncoder.forward((sent, sent_len)).

    sent: (T, B, D) array.  Returns (B, D) mean over axis 0.
    sent_len is accepted for API parity but unused (as in the reference).
    """
    del sent_len  # ignored by the reference forward
    T, B, D = sent.shape
    N = B * D
    itemsize = jnp.dtype(sent.dtype).itemsize

    if use_pallas is None:
        # Tiny problems: launch + per-step overhead dwarf the few KB of data.
        use_pallas = T * N * itemsize >= (1 << 20)
    if not use_pallas:
        return jnp.mean(sent, axis=0)

    x = sent.reshape(T, N)                 # lane-dense layout for the output row
    tn = _pick_lane_block(N, lane_block)
    tt = _pick_time_block(T, tn, itemsize, time_block)
    n_chunks = pl.cdiv(N, tn)
    t_blocks = pl.cdiv(T, tt)
    mask_tail = (T % tt) != 0

    out_dtype = sent.dtype
    needs_scratch = jnp.dtype(out_dtype) != jnp.dtype(jnp.float32)
    scratch_shapes = [pltpu.VMEM((1, tn), jnp.float32)] if needs_scratch else []

    kernel = functools.partial(_mean_time_kernel, true_t=T, tt=tt,
                               mask_tail=mask_tail)

    out = pl.pallas_call(
        kernel,
        out_shape=jax.ShapeDtypeStruct((1, N), out_dtype),
        grid_spec=pltpu.PrefetchScalarGridSpec(
            num_scalar_prefetch=0,
            grid=(n_chunks, t_blocks),                        # reduction axis last
            in_specs=[pl.BlockSpec((tt, tn), lambda n, t: (t, n))],
            out_specs=pl.BlockSpec((1, tn), lambda n, t: (0, n)),
            scratch_shapes=scratch_shapes,
        ),
        compiler_params=pltpu.CompilerParams(
            dimension_semantics=("parallel", "arbitrary"),
            vmem_limit_bytes=32 * 1024 * 1024,   # ~2x8 MiB input bufs + tiny acc
        ),
    )(x)
    return out.reshape(B, D)


if __name__ == "__main__":
    key = jax.random.PRNGKey(0)

    # Small shapes consistent with the module: seq=8, batch=2, word_emb_dim=32.
    T, B, D = 8, 2, 32
    sent = jax.random.normal(key, (T, B, D), dtype=jnp.float32)
    sent_len = jnp.full((B,), T, dtype=jnp.int32)   # ignored by forward

    # Force the Pallas path (the wrapper's heuristic would otherwise route
    # this tiny problem straight to jnp.mean).
    out = avg_encoder_forward(sent, sent_len, use_pallas=True)
    out = jax.block_until_ready(out)
    ref = jnp.mean(sent, axis=0)
    assert out.shape == (B, D)
    assert jnp.allclose(out, ref, atol=1e-6, rtol=1e-6), "mismatch vs reference mean"

    # Heuristic bypass path (tiny input -> plain XLA mean) stays correct.
    out_auto = jax.block_until_ready(avg_encoder_forward(sent, sent_len))
    assert jnp.allclose(out_auto, ref, atol=1e-6, rtol=1e-6)

    # Exercise the tiled path: T not a multiple of the time block (tail mask),
    # a lane-chunked N, and the f32-scratch path for bf16 inputs.
    T2, B2, D2 = 37, 4, 64                   # N = 256 -> two 128-lane chunks
    s2 = jax.random.normal(jax.random.PRNGKey(1), (T2, B2, D2), dtype=jnp.float32)
    o2 = jax.block_until_ready(
        avg_encoder_forward(s2, use_pallas=True, time_block=16, lane_block=128))
    assert jnp.allclose(o2, jnp.mean(s2, axis=0), atol=1e-5, rtol=1e-5)

    s3 = s2.astype(jnp.bfloat16)
    o3 = jax.block_until_ready(
        avg_encoder_forward(s3, use_pallas=True, time_block=16, lane_block=128))
    assert jnp.allclose(o3.astype(jnp.float32),
                        jnp.mean(s3.astype(jnp.float32), axis=0),
                        atol=2e-2, rtol=2e-2)

    print("KERNEL_OK")
</pallas_src>

<mosaic_0001>
module attributes {stable_mosaic.version = 11 : i64} {
  func.func @_mean_time_kernel(%arg0: i32, %arg1: i32, %arg2: memref<8x64xf32, #tpu.memory_space<vmem>>, %arg3: memref<1x64xf32, #tpu.memory_space<vmem>>) attributes {dimension_semantics = [#tpu.dimension_semantics<parallel>, #tpu.dimension_semantics<arbitrary>], iteration_bounds = array<i64: 1, 1>, scalar_prefetch = 0 : i64, scratch_operands = 0 : i64, tpu.core_type = #tpu.core_type<tc>, window_params = [{transform_indices = @transform_0, window_bounds = array<i64: 8, 64>}, {transform_indices = @transform_1, window_bounds = array<i64: 1, 64>}]} {
    %c0_i32 = arith.constant 0 : i32
    %0 = arith.cmpi eq, %arg1, %c0_i32 : i32
    %1 = arith.extui %0 : i1 to i32
    %c0_i32_0 = arith.constant 0 : i32
    %2 = arith.cmpi ne, %1, %c0_i32_0 : i32
    scf.if %2 {
      %cst_8 = arith.constant 0.000000e+00 : f32
      %12 = vector.broadcast %cst_8 : f32 to vector<1x64xf32>
      %c0_9 = arith.constant 0 : index
      %c0_10 = arith.constant 0 : index
      %13 = vector.load %arg3[%c0_9, %c0_10] : memref<1x64xf32, #tpu.memory_space<vmem>>, vector<1x64xf32>
      tpu.vector_store %arg3[%c0_9, %c0_10], %12 {strides = array<i32>} : memref<1x64xf32, #tpu.memory_space<vmem>>, vector<1x64xf32>,
    } else {
    }
    %c0 = arith.constant 0 : index
    %c0_1 = arith.constant 0 : index
    %3 = vector.load %arg2[%c0, %c0_1] : memref<8x64xf32, #tpu.memory_space<vmem>>, vector<8x64xf32>
    %c0_2 = arith.constant 0 : index
    %c0_3 = arith.constant 0 : index
    %4 = vector.load %arg3[%c0_2, %c0_3] : memref<1x64xf32, #tpu.memory_space<vmem>>, vector<1x64xf32>
    %cst = arith.constant dense<0.000000e+00> : vector<64xf32>
    %5 = vector.multi_reduction <add>, %3, %cst [0] : vector<8x64xf32> to vector<64xf32>
    %6 = vector.shape_cast %5 : vector<64xf32> to vector<1x64xf32>
    %7 = arith.addf %4, %6 : vector<1x64xf32>
    %c0_4 = arith.constant 0 : index
    %c0_5 = arith.constant 0 : index
    %8 = vector.load %arg3[%c0_4, %c0_5] : memref<1x64xf32, #tpu.memory_space<vmem>>, vector<1x64xf32>
    tpu.vector_store %arg3[%c0_4, %c0_5], %7 {strides = array<i32>} : memref<1x64xf32, #tpu.memory_space<vmem>>, vector<1x64xf32>,
    %c0_i32_6 = arith.constant 0 : i32
    %9 = arith.cmpi eq, %arg1, %c0_i32_6 : i32
    %10 = arith.extui %9 : i1 to i32
    %c0_i32_7 = arith.constant 0 : i32
    %11 = arith.cmpi ne, %10, %c0_i32_7 : i32
    scf.if %11 {
      %c0_8 = arith.constant 0 : index
      %c0_9 = arith.constant 0 : index
      %12 = vector.load %arg3[%c0_8, %c0_9] : memref<1x64xf32, #tpu.memory_space<vmem>>, vector<1x64xf32>
      %cst_10 = arith.constant 1.250000e-01 : f32
      %13 = vector.broadcast %cst_10 : f32 to vector<1x64xf32>
      %14 = arith.mulf %12, %13 : vector<1x64xf32>
      %c0_11 = arith.constant 0 : index
      %c0_12 = arith.constant 0 : index
      %15 = vector.load %arg3[%c0_11, %c0_12] : memref<1x64xf32, #tpu.memory_space<vmem>>, vector<1x64xf32>
      tpu.vector_store %arg3[%c0_11, %c0_12], %14 {strides = array<i32>} : memref<1x64xf32, #tpu.memory_space<vmem>>, vector<1x64xf32>,
    } else {
    }
    return
  }
  func.func @transform_0(%arg0: i32, %arg1: i32) -> (i32, i32) {
    %c0_i32 = arith.constant 0 : i32
    return %arg1, %arg0 : i32, i32
  }
  func.func @transform_1(%arg0: i32, %arg1: i32) -> (i32, i32) {
    %c0_i32 = arith.constant 0 : i32
    %c0_i32_0 = arith.constant 0 : i32
    return %c0_i32, %arg0 : i32, i32
  }
}

</mosaic_0001>

<bundles_post_ra>
// kernel: tpu_custom_call.1
= control target key start
LH: loop header
LB: loop body
LE: loop exit
PB: predicated region body
PF: predicated region fallthrough
CT: control target
= control target key end

     0   :  { %6 = vsyncpa [#allocation3], 0  ;;  %s152_s0 = inlined_call_operand.hbm [shape: f32[8,64], index: 0, kind: input, shape index: {}]   ;;  %s153_s1 = inlined_call_operand.hbm [shape: f32[1,64], index: 1, kind: output, shape index: {}]  }
   0x1   :  { %7 = vsyncpa [#allocation4], 0  ;;  %s112_s6 = smov [#allocation2]   ;;  %s64_s10 = scalar_lea.hbm %s152_s0, 128 }
   0x2   :  { %s14_s7 = sshll.u32 %s112_s6, 4  ;;  %p65_p0 = scmp.ne.s32.totalorder %s152_s0, %s64_s10  ;;  %s15_s7 = int_to_ptr.vmem [resolvable:$true] %s14_s7 }
   0x3   :  { %p68_p1 = scmp.lt.u32.totalorder %s64_s10, %s152_s0 }
   0x5   :  { %p70_p2 = pnand %p68_p1, %p65_p0 }
   0x7   :  { %73 = shalt.err (!%p70_p2)
}
   0x8   :  { %s74_s15 = scalar_lea.vmem %s15_s7, 128  ;;  %p79_p4 = scmp.lt.s32.totalorder %s15_s7, %s15_s7 }
   0x9   :  { %p75_p3 = scmp.ne.s32.totalorder %s15_s7, %s74_s15  ;;  %p80_p5 = scmp.lt.s32.totalorder %s74_s15, %s74_s15 }
   0xb   :  { %p81_p6 = por %p80_p5, %p79_p4 }
   0xd   :  { %p82_p7 = pnand %p81_p6, %p75_p3 }
   0xf   :  { %85 = shalt.err (!%p82_p7)
}
  0x10   :  { %17 = dma.hbm_to_vmem [thread:$0]  %s152_s0, 128, %s15_s7, [#allocation3]  }
  0x11   :  { %108 = dma.done.wait [#allocation3], 128  }
  0x12   :  { %109 = vsyncadd [#allocation3], 4294967168  ;;  %vm25_vm0 = vcmask 516096   ;;  %v113_v0 = vmov 0.0   ;;  %vm29_vm1 = vcmask 523264   ;;  %v27_v1 = vld [vmem:[#allocation2] sm:$0xff] }
  0x13   :  { %26 = vst.msk [vmem:[#allocation5] sm:$0x1] %vm25_vm0, %v113_v0  ;;  %v30_v2 = vsel %vm29_vm1, %v27_v1, 0.0  ;;  %s114_s0 = smov [#allocation5]  }
  0x14   :  { %v31_v3 = vrot.slane %v30_v2, 4  ;;  %s52_s18 = sshll.u32 %s114_s0, 4  ;;  %s53_s18 = int_to_ptr.vmem [resolvable:$true] %s52_s18 }
  0x15   :  { %s86_s19 = scalar_lea.vmem %s53_s18, 16  ;;  %s90_s20 = scalar_lea.vmem %s53_s18, 32 }
  0x16   :  { %v32_v4 = vadd.f32 %v31_v3, %v30_v2  ;;  %p87_p8 = scmp.ne.s32.totalorder %s53_s18, %s86_s19  ;;  %p91_p9 = scmp.lt.s32.totalorder %s53_s18, %s53_s18 }
  0x17   :  { %p92_p10 = scmp.lt.s32.totalorder %s90_s20, %s86_s19 }
  0x18   :  { %v33_v5 = vrot.slane %v32_v4, 2 }
  0x19   :  { %p93_p11 = por %p92_p10, %p91_p9 }
  0x1a   :  { %v34_v6 = vadd.f32 %v33_v5, %v32_v4  ;;  %v28_v8 = vld [vmem:[#allocation5] sm:$0x1] }
  0x1b   :  { %p94_p12 = pnand %p93_p11, %p87_p8 }
  0x1c   :  { %v35_v7 = vrot.slane %v34_v6, 1 }
  0x1e   :  { %v36_v9 = vadd.f32 %v35_v7, %v34_v6 }
  0x20   :  { %v37_v10 = vadd.f32 %v36_v9, %v28_v8 }
  0x22   :  { %39 = vst.msk [vmem:[#allocation5] sm:$0x1] %vm25_vm0, %v37_v10 }
  0x29   :  { %v43_v11 = vld [vmem:[#allocation5] sm:$0x1] }
  0x2a   :  { %v44_v12 = vmul.f32 0.125, %v43_v11 }
  0x2c   :  { %45 = vst.msk [vmem:[#allocation5] sm:$0x1] %vm25_vm0, %v44_v12 }
  0x2d   :  { %97 = shalt.err (!%p94_p12)
}
  0x2e   :  { %s98_s23 = scalar_lea.hbm %s153_s1, 16 }
  0x2f   :  { %p99_p13 = scmp.ne.s32.totalorder %s153_s1, %s98_s23  ;;  %p102_p0 = scmp.lt.u32.totalorder %s98_s23, %s153_s1 }
  0x31   :  { %p104_p1 = pnand %p102_p0, %p99_p13 }
  0x33   :  { %107 = shalt.err (!%p104_p1)
}
  0x34   :  { %55 = dma.vmem_to_hbm [thread:$0]  %s53_s18, 16, %s153_s1, [#allocation4]  }
  0x35   :  { %110 = dma.done.wait [#allocation4], 16  }
  0x36   :  { %111 = vsyncadd [#allocation4], 4294967280 }
  0x37   :  { %59 = vsyncpa [#allocation3], 1 }
  0x38   :  { %60 = vsyncpa [#allocation4], 1 }

</bundles_post_ra>
